<compile_context>
chip_gen: v6e
topology: v6e:2x2x1
jax: 0.10.0
libtpu: 0.0.40
codegen_flags: <defaults>
</compile_context>

<pallas_src>
import math

import jax
import jax.numpy as jnp
from jax.experimental import pallas as pl
from jax.experimental.pallas import tpu as pltpu


def mlp_kernel(xt_ref, w1t_ref, b1_ref, w234_ref, b234_ref, o_ref):
    # fc1 on the MXU: (128, 16) @ (16, TILE_B) -> (128, TILE_B), f32 accumulate.
    h = jnp.dot(w1t_ref[...], xt_ref[...], preferred_element_type=jnp.float32)
    h = jnp.maximum(h + b1_ref[...], 0.0)                      # bias + ReLU (VPU)
    # Fused fc2->fc3->fc4 == one linear map: VPU multiply + sublane reduce (XLU),
    # writing a lane-dense (1, TILE_B) row.
    o_ref[...] = jnp.sum(h * w234_ref[...], axis=0, keepdims=True) + b234_ref[...]


def simple_nn_forward(x, params, *, tile_b=256):
    """x: [B, 16] float32 -> [B, 1] float32 (matches SimpleNN.forward)."""
    (w1, b1), (w2, b2), (w3, b3), (w4, b4) = params  # w: [in, out], b: [1, out]
    B, in_f = x.shape
    hid = w1.shape[1]

    # Host-side fusion of the activation-free fc2 -> fc3 -> fc4 chain.
    w234 = w2 @ w3 @ w4                                # (128, 1)
    b234 = b2 @ w3 @ w4 + b3 @ w4 + b4                 # (1, 1)

    # Transposed layout: batch on lanes; pad batch to a multiple of the tile.
    padded_b = ((B + tile_b - 1) // tile_b) * tile_b
    xt = jnp.zeros((in_f, padded_b), jnp.float32).at[:, :B].set(x.T)
    w1t = w1.T                                         # (128, 16)
    b1c = b1.T                                         # (128, 1)

    num_tiles = padded_b // tile_b
    out = pl.pallas_call(
        mlp_kernel,
        out_shape=jax.ShapeDtypeStruct((1, padded_b), jnp.float32),
        grid=(num_tiles,),
        in_specs=[
            pl.BlockSpec((in_f, tile_b), lambda i: (0, i)),   # x^T tile (streams)
            pl.BlockSpec((hid, in_f), lambda i: (0, 0)),      # W1^T   (resident)
            pl.BlockSpec((hid, 1), lambda i: (0, 0)),         # b1 col (resident)
            pl.BlockSpec((hid, 1), lambda i: (0, 0)),         # W234   (resident)
            pl.BlockSpec((1, 1), lambda i: (0, 0)),           # b234   (resident)
        ],
        out_specs=pl.BlockSpec((1, tile_b), lambda i: (0, i)),
        compiler_params=pltpu.CompilerParams(
            dimension_semantics=("parallel",)),
    )(xt, w1t, b1c, w234, b234)

    return out[0, :B].reshape(B, 1)


def init_linear(key, in_f, out_f):
    """Deterministic init matching nn.Linear's U(-1/sqrt(in), 1/sqrt(in))."""
    kw, kb = jax.random.split(key)
    bound = 1.0 / math.sqrt(in_f)
    w = jax.random.uniform(kw, (in_f, out_f), jnp.float32, -bound, bound)
    b = jax.random.uniform(kb, (1, out_f), jnp.float32, -bound, bound)
    return w, b


def reference_forward(x, params):
    """Unfused f32 reference, literal transcription of SimpleNN.forward."""
    (w1, b1), (w2, b2), (w3, b3), (w4, b4) = params
    h = jnp.maximum(x @ w1 + b1, 0.0)
    h = h @ w2 + b2
    h = h @ w3 + b3
    return h @ w4 + b4


if __name__ == "__main__":
    key = jax.random.PRNGKey(0)
    k_x, k1, k2, k3, k4 = jax.random.split(key, 5)

    batch = 500  # non-multiple of the tile to exercise the padding path
    x = jax.random.normal(k_x, (batch, 16), jnp.float32)

    params = (
        init_linear(k1, 16, 128),
        init_linear(k2, 128, 128),
        init_linear(k3, 128, 128),
        init_linear(k4, 128, 1),
    )

    out = simple_nn_forward(x, params, tile_b=256)
    jax.block_until_ready(out)

    ref = reference_forward(x, params)
    assert out.shape == (batch, 1)
    assert jnp.allclose(out, ref, atol=5e-4, rtol=5e-4)
    print("KERNEL_OK")
</pallas_src>

<mosaic_0001>
module attributes {stable_mosaic.version = 11 : i64} {
  func.func @mlp_kernel(%arg0: i32, %arg1: memref<16x256xf32, #tpu.memory_space<vmem>>, %arg2: memref<128x16xf32, #tpu.memory_space<vmem>>, %arg3: memref<128x1xf32, #tpu.memory_space<vmem>>, %arg4: memref<128x1xf32, #tpu.memory_space<vmem>>, %arg5: memref<1x1xf32, #tpu.memory_space<vmem>>, %arg6: memref<1x256xf32, #tpu.memory_space<vmem>>) attributes {dimension_semantics = [#tpu.dimension_semantics<parallel>], iteration_bounds = array<i64: 2>, scalar_prefetch = 0 : i64, scratch_operands = 0 : i64, tpu.core_type = #tpu.core_type<tc>, window_params = [{transform_indices = @transform_0, window_bounds = array<i64: 16, 256>}, {pipeline_mode = #tpu.pipeline_mode<synchronous>, transform_indices = @transform_1, window_bounds = array<i64: 128, 16>}, {pipeline_mode = #tpu.pipeline_mode<synchronous>, transform_indices = @transform_2, window_bounds = array<i64: 128, 1>}, {pipeline_mode = #tpu.pipeline_mode<synchronous>, transform_indices = @transform_3, window_bounds = array<i64: 128, 1>}, {pipeline_mode = #tpu.pipeline_mode<synchronous>, transform_indices = @transform_4, window_bounds = array<i64: 1, 1>}, {transform_indices = @transform_5, window_bounds = array<i64: 1, 256>}]} {
    %c0 = arith.constant 0 : index
    %c0_0 = arith.constant 0 : index
    %0 = vector.load %arg2[%c0, %c0_0] : memref<128x16xf32, #tpu.memory_space<vmem>>, vector<128x16xf32>
    %c0_1 = arith.constant 0 : index
    %c0_2 = arith.constant 0 : index
    %1 = vector.load %arg1[%c0_1, %c0_2] : memref<16x256xf32, #tpu.memory_space<vmem>>, vector<16x256xf32>
    %cst = arith.constant dense<0.000000e+00> : vector<128x256xf32>
    %2 = tpu.matmul %0, %1, %cst {dimension_numbers = #tpu.dot_dimension_numbers<[1], [0], [0], [1], [0, 0, 1, 1], [], []>} : vector<128x16xf32>, vector<16x256xf32>, vector<128x256xf32> -> vector<128x256xf32>
    %c0_3 = arith.constant 0 : index
    %c0_4 = arith.constant 0 : index
    %3 = vector.load %arg3[%c0_3, %c0_4] : memref<128x1xf32, #tpu.memory_space<vmem>>, vector<128x1xf32>
    %4 = vector.broadcast %3 : vector<128x1xf32> to vector<128x256xf32>
    %5 = arith.addf %2, %4 : vector<128x256xf32>
    %cst_5 = arith.constant 0.000000e+00 : f32
    %6 = vector.broadcast %cst_5 : f32 to vector<128x256xf32>
    %7 = arith.maximumf %5, %6 : vector<128x256xf32>
    %c0_6 = arith.constant 0 : index
    %c0_7 = arith.constant 0 : index
    %8 = vector.load %arg4[%c0_6, %c0_7] : memref<128x1xf32, #tpu.memory_space<vmem>>, vector<128x1xf32>
    %9 = vector.broadcast %8 : vector<128x1xf32> to vector<128x256xf32>
    %10 = arith.mulf %7, %9 : vector<128x256xf32>
    %cst_8 = arith.constant dense<0.000000e+00> : vector<256xf32>
    %11 = vector.multi_reduction <add>, %10, %cst_8 [0] : vector<128x256xf32> to vector<256xf32>
    %12 = vector.shape_cast %11 : vector<256xf32> to vector<1x256xf32>
    %c0_9 = arith.constant 0 : index
    %c0_10 = arith.constant 0 : index
    %13 = vector.load %arg5[%c0_9, %c0_10] : memref<1x1xf32, #tpu.memory_space<vmem>>, vector<1x1xf32>
    %14 = vector.broadcast %13 : vector<1x1xf32> to vector<1x256xf32>
    %15 = arith.addf %12, %14 : vector<1x256xf32>
    %c0_11 = arith.constant 0 : index
    %c0_12 = arith.constant 0 : index
    %16 = vector.load %arg6[%c0_11, %c0_12] : memref<1x256xf32, #tpu.memory_space<vmem>>, vector<1x256xf32>
    tpu.vector_store %arg6[%c0_11, %c0_12], %15 {strides = array<i32>} : memref<1x256xf32, #tpu.memory_space<vmem>>, vector<1x256xf32>,
    return
  }
  func.func @transform_0(%arg0: i32) -> (i32, i32) {
    %c0_i32 = arith.constant 0 : i32
    %c0_i32_0 = arith.constant 0 : i32
    return %c0_i32, %arg0 : i32, i32
  }
  func.func @transform_1(%arg0: i32) -> (i32, i32) {
    %c0_i32 = arith.constant 0 : i32
    %c0_i32_0 = arith.constant 0 : i32
    %c0_i32_1 = arith.constant 0 : i32
    return %c0_i32, %c0_i32_0 : i32, i32
  }
  func.func @transform_2(%arg0: i32) -> (i32, i32) {
    %c0_i32 = arith.constant 0 : i32
    %c0_i32_0 = arith.constant 0 : i32
    %c0_i32_1 = arith.constant 0 : i32
    return %c0_i32, %c0_i32_0 : i32, i32
  }
  func.func @transform_3(%arg0: i32) -> (i32, i32) {
    %c0_i32 = arith.constant 0 : i32
    %c0_i32_0 = arith.constant 0 : i32
    %c0_i32_1 = arith.constant 0 : i32
    return %c0_i32, %c0_i32_0 : i32, i32
  }
  func.func @transform_4(%arg0: i32) -> (i32, i32) {
    %c0_i32 = arith.constant 0 : i32
    %c0_i32_0 = arith.constant 0 : i32
    %c0_i32_1 = arith.constant 0 : i32
    return %c0_i32, %c0_i32_0 : i32, i32
  }
  func.func @transform_5(%arg0: i32) -> (i32, i32) {
    %c0_i32 = arith.constant 0 : i32
    %c0_i32_0 = arith.constant 0 : i32
    return %c0_i32, %arg0 : i32, i32
  }
}

</mosaic_0001>

<bundles_post_ra>
// kernel: tpu_custom_call.1
= control target key start
LH: loop header
LB: loop body
LE: loop exit
PB: predicated region body
PF: predicated region fallthrough
CT: control target
= control target key end

     0   :  { %s1456_s0 = inlined_call_operand.vmem [shape: f32[16,512], index: 0, kind: input, shape index: {}]   ;;  %s1457_s1 = inlined_call_operand.vmem [shape: f32[128,16], index: 1, kind: input, shape index: {}]   ;;  %s1458_s2 = inlined_call_operand.vmem [shape: f32[128,1], index: 2, kind: input, shape index: {}]   ;;  %s1459_s3 = inlined_call_operand.vmem [shape: f32[128,1], index: 3, kind: input, shape index: {}]   ;;  %s1460_s4 = inlined_call_operand.<no memory space> [shape: f32[1,1], index: 4, kind: input, shape index: {}]   ;;  %s1461_s5 = inlined_call_operand.hbm [shape: f32[1,512], index: 5, kind: output, shape index: {}]  }
   0x1   :  { %v10_v0 = vstv %s1460_s4 }
   0x2   :  { %11 = vst [vmem:[#allocation2] sm:$0x1] %v10_v0 }
   0x3   :  { %12 = vsyncpa [#allocation5], 0 }
   0x4   :  { %14 = vsyncpa [#allocation5 + $0x1], 0  ;;  %s1075_s20 = smov 0   ;;  %s1077_s21 = smov 0  }
   0x5   :  { %s1079_s22 = smov 0   ;;  %s1081_s23 = smov 0  }
   0x6 LB: > { %s895_s4 = sadd.s32 4294967295, %s1036_s23   ;;  %s896_s24 = sadd.s32 4294967294, %s1036_s23   ;;  %s1036_s23 = sphi %s1081_s23, %s1469_s23   ;;  %s1032_s22 = sphi %s1079_s22, %s1468_s22   ;;  %s1028_s21 = sphi %s1077_s21, %s1467_s21   ;;  %s1024_s20 = sphi %s1075_s20, %s1466_s20  }
   0x7   : > { %s1098_s25 = sadd.s32 1, %s1036_s23   ;;  %s27_s26 = sadd.s32 1, %s1032_s22 }
   0x8   : > { %s24_s27 = ssub.s32 %s1036_s23, %s1098_s25  ;;  %p34_p0 = scmp.ne.s32.totalorder %s1032_s22, %s1028_s21 }
   0x9   : > { %p25_p1 = scmp.eq.s32.totalorder %s24_s27, 0  ;;  %p35_p2 = scmp.eq.s32.totalorder %s1036_s23, 0 }
   0xa   : > { %p148_p3 = scmp.eq.s32.totalorder %s895_s4, 1  ;;  %p153_p4 = scmp.ne.s32.totalorder %s1028_s21, %s1024_s20 }
   0xb   : > { %s1111_s28 = scalar_select %p25_p1, %s1032_s22, %s27_s26  }
   0xc   : > { %p36_p5 = por %p35_p2, %p34_p0  ;;  %p1113_p6 = por %p148_p3, %p34_p0 }
   0xd   : > { %p154_p7 = scmp.eq.s32.totalorder %s896_s24, 1  ;;  %p1462_p9 = scmp.ge.s32.totalorder %s1036_s23, 2 }
   0xf   : > { %p1117_p8 = por %p154_p7, %p153_p4  ;;  %182 = sbr.rel (%p1462_p9) target bundleno = 26 (0x1a), region = 32 }
  0x14   : > { %185 = sbr.rel (!%p36_p5) target bundleno = 26 (0x1a), region = 36  ;;  %s187_s6 = sand.u32 (%p36_p5), 1, %s1032_s22  }
  0x15   : > { %s926_s7 = sshll.u32 (%p36_p5), %s1036_s23, 4  ;;  %s899_s8 = sshll.u32 (%p36_p5), %s187_s6, 5 }
  0x16   : > { %s192_s11 = scalar_lea.vmem (%p36_p5), %s1456_s0, %s926_s7  ;;  %s189_s12 = scalar_lea.vmem (%p36_p5), [#allocation3], %s899_s8 }
  0x17   : > { %v205_v1 = vld [vmem:[%s192_s11] sm:$0xff] (%p36_p5)  ;;  %v207_v2 = vld [vmem:[%s192_s11 + $0x8] sm:$0xff] (%p36_p5) }
  0x18   : > { %v209_v3 = vld [vmem:[%s192_s11 + $0x20] sm:$0xff] (%p36_p5)  ;;  %206 = vst [vmem:[%s189_s12] sm:$0xff] (%p36_p5), %v205_v1  ;;  %208 = vst [vmem:[%s189_s12 + $0x8] sm:$0xff] (%p36_p5), %v207_v2  ;;  %v211_v4 = vld [vmem:[%s192_s11 + $0x28] sm:$0xff] (%p36_p5) }
  0x19   : > { %210 = vst [vmem:[%s189_s12 + $0x10] sm:$0xff] %v209_v3  ;;  %212 = vst [vmem:[%s189_s12 + $0x18] sm:$0xff] %v211_v4 }
  0x1a PF: > { %p902_p10 = scmp.ge.s32.totalorder %s1036_s23, 1  ;;  %p217_p11 = scmp.lt.s32.totalorder %s1036_s23, 3 }
  0x1c   : > { %p218_p12 = pnand %p902_p10, %p217_p11 }
  0x1d   : > { %s1135_s15 = sand.u32 (!%p218_p12), 1, %s1028_s21   ;;  %s927_s17 = sshll.u32 (!%p218_p12), %s895_s4, 5 }
  0x1e   : > { %221 = sbr.rel (%p218_p12) target bundleno = 323 (0x143), region = 59  ;;  %s903_s18 = sshll.u32 (!%p218_p12), %s1135_s15, 5 }
  0x1f   : > { %s226_s26 = scalar_lea.vmem (!%p218_p12), [#allocation3], %s903_s18  ;;  %s904_s16 = sshll.u32 (!%p218_p12), %s1135_s15, 1 }
  0x20   : > { %s250_s18 = scalar_lea.vmem (!%p218_p12), [#allocation4], %s904_s16  ;;  %s829_s27 = scalar_lea.hbm (!%p218_p12), %s1461_s5, %s927_s17 }
  0x21   : > { %s831_s19 = sshll.u32 (!%p218_p12), %s250_s18, 4  ;;  %s817_s6 = scalar_lea.sflag (!%p218_p12), [#allocation5], %s1135_s15  ;;  %s832_s19 = int_to_ptr.vmem [resolvable:$true] %s831_s19 }
  0x22   : > { %s976_s7 = scalar_lea.vmem (!%p218_p12), %s832_s19, 32  ;;  %s1041_s8 = smov (!%p218_p12), [#allocation4]  }
  0x23   : > { %v273_v5 = vld [vmem:[%s1458_s2] sm:$0xff]  ;;  %v275_v6 = vld [vmem:[%s1458_s2 + $0x10] sm:$0xff]  ;;  %v1038_v7 = vmov 0   ;;  %v274_v8 = vld [vmem:[%s1458_s2 + $0x8] sm:$0xff]  ;;  %v1039_v9 = vmov 0.0   ;;  %vm369_vm0 = vcmask 130048   ;;  %p977_p13 = scmp.ne.s32.totalorder %s832_s19, %s976_s7 }
  0x24   : > { %974 = vset.pattern.permute.xlu0 %v1038_v7  ;;  %975 = vset.pattern.permute.xlu1 %v1038_v7  ;;  %v272_v10 = vld [vmem:[%s226_s26 + $0x18] sm:$0xff]  ;;  %v271_v11 = vld [vmem:[%s226_s26 + $0x10] sm:$0xff]  ;;  %v270_v12 = vld [vmem:[%s226_s26 + $0x8] sm:$0xff]  ;;  %s980_s9 = sshll.u32 %s1041_s8, 4  ;;  %s981_s9 = int_to_ptr.vmem [resolvable:$false] %s980_s9 }
  0x25   : > { %291 = vperm.xlu0 %974, %v273_v5   ;;  %482 = vmatprep.mubr.f32.mxu0 %v1039_v9  ;;  %v269_v13 = vld [vmem:[%s226_s26] sm:$0xff]  ;;  %v276_v16 = vld [vmem:[%s1458_s2 + $0x18] sm:$0xff]  ;;  %v255_v22 = vld [vmem:[%s1457_s1 + $0x10] sm:$0xff]  ;;  %p978_p0 = pnand %p977_p13, %p1113_p6  ;;  %s982_s4 = scalar_lea.vmem %s981_s9, 64 }
  0x26   : > { %530 = vmatprep.mubr.f32.mxu1 %v1039_v9  ;;  %301 = vperm.xlu1 %975, %v275_v6   ;;  %v253_v14 = vld [vmem:[%s1457_s1] sm:$0xff]  ;;  %v254_v18 = vld [vmem:[%s1457_s1 + $0x8] sm:$0xff]  ;;  %v263_v23 = vld [vmem:[%s1457_s1 + $0x50] sm:$0xff]  ;;  %p983_p2 = scmp.lt.s32.totalorder %s832_s19, %s981_s9  ;;  %p984_p3 = scmp.lt.s32.totalorder %s982_s4, %s976_s7 }
  0x27   : > { %446 = vmatprep.subr.mxu0 %v272_v10  ;;  %928 = vmatprep.subr.mxu1 %v272_v10  ;;  %v261_v15 = vld [vmem:[%s1457_s1 + $0x40] sm:$0xff]  ;;  %v262_v19 = vld [vmem:[%s1457_s1 + $0x48] sm:$0xff]  ;;  %v613_v24 = vld [vmem:[%s1459_s3 + $0x10] sm:$0xff]  ;;  %p979_p1 = pneg %p978_p0 }
  0x28   : > { %447 = vmatpush1.msra.mxu0 %v271_v11  ;;  %930 = vmatpush1.msra.mxu1 %v271_v11  ;;  %v611_v17 = vld [vmem:[%s1459_s3] sm:$0xff]  ;;  %v612_v20 = vld [vmem:[%s1459_s3 + $0x8] sm:$0xff]  ;;  %v256_v26 = vld [vmem:[%s1457_s1 + $0x18] sm:$0xff]  ;;  %p985_p4 = por %p984_p3, %p983_p2 }
  0x29   : > { %296 = vperm.xlu0 %974, %v274_v8   ;;  %448 = vmatprep.subr.mxu0 %v270_v12  ;;  %v277_v21 = vld [vmem:[%s1458_s2 + $0x20] sm:$0xff]  ;;  %v278_v25 = vld [vmem:[%s1458_s2 + $0x28] sm:$0xff]  ;;  %v264_v27 = vld [vmem:[%s1457_s1 + $0x58] sm:$0xff] }
  0x2a   : > { %929 = vmatprep.subr.mxu1 %v270_v12  ;;  %449 = vmatpush1.msra.mxu0 %v269_v13  ;;  %v614_v28 = vld [vmem:[%s1459_s3 + $0x18] sm:$0xff]  ;;  %v279_v29 = vld [vmem:[%s1458_s2 + $0x30] sm:$0xff]  ;;  %v257_v30 = vld [vmem:[%s1457_s1 + $0x20] sm:$0xff]  ;;  %p986_p5 = pnand %p985_p4, %p979_p1 }
  0x2b   : > { %931 = vmatpush1.msra.mxu1 %v269_v13  ;;  %905 = vmatmul.mubr.msk.f32.vlgmr.msra.gmra.mxu0 %vm369_vm0, %v253_v14  ;;  %v265_v31 = vld [vmem:[%s1457_s1 + $0x60] sm:$0xff]  ;;  %v280_v33 = vld [vmem:[%s1458_s2 + $0x38] sm:$0xff]  ;;  %v258_v34 = vld [vmem:[%s1457_s1 + $0x28] sm:$0xff] }
  0x2c   : > { %913 = vmatmul.mubr.msk.f32.vlgmr.msra.gmra.mxu1 %vm369_vm0, %v261_v15  ;;  %306 = vperm.xlu1 %975, %v276_v16   ;;  %v615_v32 = vld [vmem:[%s1459_s3 + $0x20] sm:$0xff]  ;;  %v266_v35 = vld [vmem:[%s1457_s1 + $0x68] sm:$0xff]  ;;  %v259_v38 = vld [vmem:[%s1457_s1 + $0x30] sm:$0xff] }
  0x2d   : > { %629 = vperm.xlu0 %974, %v611_v17   ;;  %488 = vmatprep.mubr.f32.mxu0 %v1039_v9  ;;  %v616_v36 = vld [vmem:[%s1459_s3 + $0x28] sm:$0xff]  ;;  %v281_v37 = vld [vmem:[%s1458_s2 + $0x40] sm:$0xff]  ;;  %v267_v39 = vld [vmem:[%s1457_s1 + $0x70] sm:$0xff] }
  0x2e   : > { %536 = vmatprep.mubr.f32.mxu1 %v1039_v9  ;;  %v617_v40 = vld [vmem:[%s1459_s3 + $0x30] sm:$0xff]  ;;  %v282_v41 = vld [vmem:[%s1458_s2 + $0x48] sm:$0xff]  ;;  %v260_v42 = vld [vmem:[%s1457_s1 + $0x38] sm:$0xff] }
  0x2f   : > { %906 = vmatmul.mubr.msk.f32.gmra.mxu0 %vm369_vm0, %v254_v18  ;;  %v268_v43 = vld [vmem:[%s1457_s1 + $0x78] sm:$0xff]  ;;  %v283_v45 = vld [vmem:[%s1458_s2 + $0x50] sm:$0xff]  ;;  %v619_v46 = vld [vmem:[%s1459_s3 + $0x40] sm:$0xff] }
  0x30   : > { %914 = vmatmul.mubr.msk.f32.gmra.mxu1 %vm369_vm0, %v262_v19  ;;  %634 = vperm.xlu1 %975, %v612_v20   ;;  %v618_v44 = vld [vmem:[%s1459_s3 + $0x38] sm:$0xff]  ;;  %v620_v48 = vld [vmem:[%s1459_s3 + $0x48] sm:$0xff]  ;;  %v285_v49 = vld [vmem:[%s1458_s2 + $0x60] sm:$0xff] }
  0x31   : > { %311 = vperm.xlu0 %974, %v277_v21   ;;  %494 = vmatprep.mubr.f32.mxu0 %v1039_v9  ;;  %v284_v47 = vld [vmem:[%s1458_s2 + $0x58] sm:$0xff]  ;;  %v621_v50 = vld [vmem:[%s1459_s3 + $0x50] sm:$0xff]  ;;  %v286_v51 = vld [vmem:[%s1458_s2 + $0x68] sm:$0xff] }
  0x32   : > { %542 = vmatprep.mubr.f32.mxu1 %v1039_v9  ;;  %v622_v52 = vld [vmem:[%s1459_s3 + $0x58] sm:$0xff]  ;;  %v287_v53 = vld [vmem:[%s1458_s2 + $0x70] sm:$0xff]  ;;  %v623_v54 = vld [vmem:[%s1459_s3 + $0x60] sm:$0xff] }
  0x33   : > { %907 = vmatmul.mubr.msk.f32.gmra.mxu0 %vm369_vm0, %v255_v22  ;;  %v288_v55 = vld [vmem:[%s1458_s2 + $0x78] sm:$0xff]  ;;  %v624_v56 = vld [vmem:[%s1459_s3 + $0x68] sm:$0xff]  ;;  %v625_v57 = vld [vmem:[%s1459_s3 + $0x70] sm:$0xff] }
  0x34   : > { %915 = vmatmul.mubr.msk.f32.gmra.mxu1 %vm369_vm0, %v263_v23  ;;  %639 = vperm.xlu1 %975, %v613_v24   ;;  %v626_v58 = vld [vmem:[%s1459_s3 + $0x78] sm:$0xff]  ;;  %v781_v59 = vld [vmem:[#allocation2] sm:$0x1] }
  0x35   : > { %316 = vperm.xlu0 %974, %v278_v25   ;;  %500 = vmatprep.mubr.f32.mxu0 %v1039_v9 }
  0x36   : > { %548 = vmatprep.mubr.f32.mxu1 %v1039_v9 }
  0x37   : > { %908 = vmatmul.mubr.msk.f32.gmra.mxu0 %vm369_vm0, %v256_v26 }
  0x38   : > { %916 = vmatmul.mubr.msk.f32.gmra.mxu1 %vm369_vm0, %v264_v27  ;;  %644 = vperm.xlu1 %975, %v614_v28  }
  0x39   : > { %321 = vperm.xlu0 %974, %v279_v29   ;;  %506 = vmatprep.mubr.f32.mxu0 %v1039_v9 }
  0x3a   : > { %554 = vmatprep.mubr.f32.mxu1 %v1039_v9 }
  0x3b   : > { %909 = vmatmul.mubr.msk.f32.gmra.mxu0 %vm369_vm0, %v257_v30 }
  0x3c   : > { %917 = vmatmul.mubr.msk.f32.gmra.mxu1 %vm369_vm0, %v265_v31  ;;  %649 = vperm.xlu1 %975, %v615_v32  }
  0x3d   : > { %326 = vperm.xlu0 %974, %v280_v33   ;;  %512 = vmatprep.mubr.f32.mxu0 %v1039_v9 }
  0x3e   : > { %560 = vmatprep.mubr.f32.mxu1 %v1039_v9 }
  0x3f   : > { %910 = vmatmul.mubr.msk.f32.gmra.mxu0 %vm369_vm0, %v258_v34 }
  0x40   : > { %918 = vmatmul.mubr.msk.f32.gmra.mxu1 %vm369_vm0, %v266_v35  ;;  %654 = vperm.xlu1 %975, %v616_v36  }
  0x41   : > { %331 = vperm.xlu0 %974, %v281_v37   ;;  %518 = vmatprep.mubr.f32.mxu0 %v1039_v9 }
  0x42   : > { %566 = vmatprep.mubr.f32.mxu1 %v1039_v9 }
  0x43   : > { %911 = vmatmul.mubr.msk.f32.gmra.mxu0 %vm369_vm0, %v259_v38 }
  0x44   : > { %919 = vmatmul.mubr.msk.f32.gmra.mxu1 %vm369_vm0, %v267_v39  ;;  %659 = vperm.xlu1 %975, %v617_v40  }
  0x45   : > { %336 = vperm.xlu0 %974, %v282_v41   ;;  %524 = vmatprep.mubr.f32.mxu0 %v1039_v9 }
  0x46   : > { %572 = vmatprep.mubr.f32.mxu1 %v1039_v9 }
  0x47   : > { %912 = vmatmul.mubr.msk.f32.gmra.mxu0 %vm369_vm0, %v260_v42 }
  0x48   : > { %920 = vmatmul.mubr.msk.f32.gmra.mxu1 %vm369_vm0, %v268_v43  ;;  %664 = vperm.xlu1 %975, %v618_v44  }
  0x49   : > { %341 = vperm.xlu0 %974, %v283_v45  }
  0x4c   : > { %669 = vperm.xlu1 %975, %v619_v46  }
  0x4d   : > { %346 = vperm.xlu0 %974, %v284_v47  }
  0x50   : > { %674 = vperm.xlu1 %975, %v620_v48  }
  0x51   : > { %351 = vperm.xlu0 %974, %v285_v49  }
  0x54   : > { %679 = vperm.xlu1 %975, %v621_v50  }
  0x55   : > { %356 = vperm.xlu0 %974, %v286_v51  }
  0x58   : > { %684 = vperm.xlu1 %975, %v622_v52  }
  0x59   : > { %361 = vperm.xlu0 %974, %v287_v53  }
  0x5c   : > { %689 = vperm.xlu1 %975, %v623_v54  }
  0x5d   : > { %366 = vperm.xlu0 %974, %v288_v55  }
  0x60   : > { %694 = vperm.xlu1 %975, %v624_v56  }
  0x61   : > { %699 = vperm.xlu0 %974, %v625_v57  }
  0x64   : > { %704 = vperm.xlu1 %975, %v626_v58  }
  0x65   : > { %784 = vperm.xlu0 %974, %v781_v59  }
  0xa0   : > { %v292_v60 = vpop.permute.xlu0 %291 }
  0xa1   : > { %v302_v61 = vpop.permute.xlu1 %301 }
  0xa4   : > { %v297_v62 = vpop.permute.xlu0 %296 }
  0xa7   : > { %v307_v63 = vpop.permute.xlu1 %306 }
  0xa8   : > { %v1311_v0 = vpop.permute.xlu0 %629 }
  0xab   : > { %v635_v1 = vpop.permute.xlu1 %634 }
  0xac   : > { %v312_v2 = vpop.permute.xlu0 %311 }
  0xaf   : > { %v1313_v3 = vpop.permute.xlu1 %639 }
  0xb0   : > { %v1315_v4 = vpop.permute.xlu0 %316 }
  0xb3   : > { %v1317_v5 = vpop.permute.xlu1 %644 }
  0xb4   : > { %v1319_v6 = vpop.permute.xlu0 %321 }
  0xb7   : > { %v1321_v7 = vpop.permute.xlu1 %649 }
  0xb8   : > { %v1323_v8 = vpop.permute.xlu0 %326 }
  0xbb   : > { %v1325_v9 = vpop.permute.xlu1 %654 }
  0xbc   : > { %v1327_v10 = vpop.permute.xlu0 %331 }
  0xbf   : > { %v1329_v11 = vpop.permute.xlu1 %659 }
  0xc0   : > { %v1333_v15 = vpop.permute.xlu0 %336 }
  0xc3   : > { %v1337_v18 = vpop.permute.xlu1 %664 }
  0xc4   : > { %v1343_v23 = vpop.permute.xlu0 %341 }
  0xc7   : > { %v1347_v27 = vpop.permute.xlu1 %669 }
  0xc8   : > { %v1353_v39 = vpop.permute.xlu0 %346 }
  0xcb   : > { %v1357_v46 = vpop.permute.xlu1 %674 }
  0xeb   : > { %v484_v12 = vpop.f32.mrf.mxu0 }
  0xec   : > { %v1331_v13 = vpop.f32.mrf.mxu1  ;;  %v485_v28 = vadd.f32 %v484_v12, %v292_v60 }
  0xed   : > { %v486_v14 = vpop.f32.mrf.mxu0 }
  0xee   : > { %v1335_v16 = vpop.f32.mrf.mxu1  ;;  %v487_v33 = vadd.f32 %v486_v14, %v292_v60  ;;  %v579_v40 = vmax.f32 %v485_v28, 0.0 }
  0xef   : > { %v490_v17 = vpop.f32.mrf.mxu0 }
  0xf0   : > { %v1339_v19 = vpop.f32.mrf.mxu1  ;;  %v491_v25 = vadd.f32 %v490_v17, %v297_v62  ;;  %v580_v47 = vmax.f32 %v487_v33, 0.0  ;;  %v707_v54 = vmul.f32 %v1311_v0, %v579_v40 }
  0xf1   : > { %v492_v20 = vpop.f32.mrf.mxu0 }
  0xf2   : > { %v1341_v21 = vpop.f32.mrf.mxu1  ;;  %v493_v30 = vadd.f32 %v492_v20, %v297_v62  ;;  %v581_v35 = vmax.f32 %v491_v25, 0.0  ;;  %v1365_v62 = vpop.permute.xlu0 %351 }
  0xf3   : > { %v496_v22 = vpop.f32.mrf.mxu0  ;;  %v1373_v25 = vpop.permute.xlu1 %679 }
  0xf4   : > { %v1345_v24 = vpop.f32.mrf.mxu1  ;;  %v497_v31 = vadd.f32 %v496_v22, %v302_v61  ;;  %v582_v42 = vmax.f32 %v493_v30, 0.0  ;;  %v709_v50 = vmul.f32 %v635_v1, %v581_v35 }
  0xf5   : > { %v498_v26 = vpop.f32.mrf.mxu0 }
  0xf6   : > { %v1349_v29 = vpop.f32.mrf.mxu1  ;;  %v499_v36 = vadd.f32 %v498_v26, %v302_v61  ;;  %v583_v43 = vmax.f32 %v497_v31, 0.0  ;;  %v710_v57 = vmul.f32 %v635_v1, %v582_v42  ;;  %v739_v17 = vadd.f32 %v709_v50, %v707_v54 }
  0xf7   : > { %v502_v32 = vpop.f32.mrf.mxu0 }
  0xf8   : > { %v1351_v34 = vpop.f32.mrf.mxu1  ;;  %v503_v37 = vadd.f32 %v502_v32, %v307_v63  ;;  %v584_v51 = vmax.f32 %v499_v36, 0.0  ;;  %v711_v58 = vmul.f32 %v1313_v3, %v583_v43  ;;  %v357_v43 = vpop.permute.xlu0 %356 }
  0xf9   : > { %v504_v38 = vpop.f32.mrf.mxu0 }
  0xfa   : > { %v1355_v41 = vpop.f32.mrf.mxu1  ;;  %v505_v44 = vadd.f32 %v504_v38, %v307_v63  ;;  %v585_v52 = vmax.f32 %v503_v37, 0.0  ;;  %v708_v63 = vmul.f32 %v1311_v0, %v580_v47  ;;  %v712_v20 = vmul.f32 %v1313_v3, %v584_v51 }
  0xfb   : > { %v508_v45 = vpop.f32.mrf.mxu0  ;;  %v740_v31 = vadd.f32 %v739_v17, %v711_v58  ;;  %v533_v37 = vadd.f32 %v1331_v13, %v1327_v10  ;;  %v535_v47 = vadd.f32 %v1335_v16, %v1327_v10  ;;  %v545_v10 = vadd.f32 %v1345_v24, %v1343_v23 }
  0xfc   : > { %v509_v48 = vadd.f32 %v508_v45, %v312_v2  ;;  %v1359_v49 = vpop.f32.mrf.mxu1  ;;  %v586_v59 = vmax.f32 %v505_v44, 0.0  ;;  %v760_v30 = vadd.f32 %v710_v57, %v708_v63  ;;  %v685_v57 = vpop.permute.xlu1 %684  ;;  %v547_v17 = vadd.f32 %v1349_v29, %v1343_v23 }
  0xfd   : > { %v510_v53 = vpop.f32.mrf.mxu0  ;;  %v595_v58 = vmax.f32 %v533_v37, 0.0  ;;  %v596_v63 = vmax.f32 %v535_v47, 0.0  ;;  %v599_v23 = vmax.f32 %v545_v10, 0.0 }
  0xfe   : > { %v511_v55 = vadd.f32 %v510_v53, %v312_v2  ;;  %v1362_v56 = vpop.f32.mrf.mxu1  ;;  %v587_v60 = vmax.f32 %v509_v48, 0.0  ;;  %v713_v2 = vmul.f32 %v1317_v5, %v585_v52  ;;  %v714_v0 = vmul.f32 %v1317_v5, %v586_v59 }
  0xff   : > { %v514_v61 = vpop.f32.mrf.mxu0  ;;  %v761_v38 = vadd.f32 %v760_v30, %v712_v20  ;;  %v539_v48 = vadd.f32 %v1339_v19, %v1333_v15  ;;  %v551_v20 = vadd.f32 %v1351_v34, %v1353_v39  ;;  %v724_v37 = vmul.f32 %v1347_v27, %v596_v63 }
 0x100   : > { %v515_v12 = vadd.f32 %v514_v61, %v1315_v4  ;;  %v1369_v14 = vpop.f32.mrf.mxu1  ;;  %v588_v22 = vmax.f32 %v511_v55, 0.0  ;;  %v715_v32 = vmul.f32 %v1321_v7, %v587_v60  ;;  %v741_v40 = vadd.f32 %v740_v31, %v713_v2  ;;  %v690_v31 = vpop.permute.xlu1 %689 }
 0x101   : > { %v516_v1 = vpop.f32.mrf.mxu0  ;;  %v762_v50 = vadd.f32 %v761_v38, %v714_v0  ;;  %v600_v0 = vmax.f32 %v547_v17, 0.0 }
 0x102   : > { %v589_v26 = vmax.f32 %v515_v12, 0.0  ;;  %v517_v28 = vadd.f32 %v516_v1, %v1315_v4  ;;  %v1378_v33 = vpop.f32.mrf.mxu1  ;;  %v716_v42 = vmul.f32 %v1321_v7, %v588_v22  ;;  %v742_v51 = vadd.f32 %v741_v40, %v715_v32  ;;  %v362_v1 = vpop.permute.xlu0 %361 }
 0x103   : > { %v520_v35 = vpop.f32.mrf.mxu0  ;;  %v597_v12 = vmax.f32 %v539_v48, 0.0  ;;  %v601_v32 = vmax.f32 %v551_v20, 0.0 }
 0x104   : > { %v590_v36 = vmax.f32 %v517_v28, 0.0  ;;  %v521_v3 = vadd.f32 %v520_v35, %v1319_v6  ;;  %v717_v44 = vmul.f32 %v1325_v9, %v589_v26  ;;  %v568_v13 = vpop.f32.mrf.mxu1  ;;  %v763_v16 = vadd.f32 %v762_v50, %v716_v42 }
 0x105   : > { %v522_v4 = vpop.f32.mrf.mxu0  ;;  %v557_v28 = vadd.f32 %v1359_v49, %v1365_v62  ;;  %v559_v35 = vadd.f32 %v1362_v56, %v1365_v62 }
 0x106   : > { %v591_v5 = vmax.f32 %v521_v3, 0.0  ;;  %v523_v45 = vadd.f32 %v522_v4, %v1319_v6  ;;  %v718_v53 = vmul.f32 %v1325_v9, %v590_v36  ;;  %v541_v6 = vadd.f32 %v1341_v21, %v1333_v15  ;;  %v570_v15 = vpop.f32.mrf.mxu1  ;;  %v367_v62 = vpop.permute.xlu0 %366 }
 0x107   : > { %v526_v52 = vpop.f32.mrf.mxu0  ;;  %v743_v59 = vadd.f32 %v742_v51, %v717_v44  ;;  %v563_v36 = vadd.f32 %v1369_v14, %v357_v43  ;;  %v603_v42 = vmax.f32 %v557_v28, 0.0  ;;  %v727_v4 = vmul.f32 %v1373_v25, %v599_v23 }
 0x108   : > { %v719_v7 = vmul.f32 %v1329_v11, %v591_v5  ;;  %v592_v54 = vmax.f32 %v523_v45, 0.0  ;;  %v527_v55 = vadd.f32 %v526_v52, %v1323_v8  ;;  %v764_v21 = vadd.f32 %v763_v16, %v718_v53  ;;  %v574_v3 = vpop.f32.mrf.mxu1  ;;  %v695_v53 = vpop.permute.xlu1 %694 }
 0x109   : > { %v528_v19 = vpop.f32.mrf.mxu0  ;;  %v598_v26 = vmax.f32 %v541_v6, 0.0  ;;  %v569_v44 = vadd.f32 %v568_v13, %v362_v1  ;;  %v728_v14 = vmul.f32 %v1373_v25, %v600_v0  ;;  %v729_v45 = vmul.f32 %v685_v57, %v601_v32 }
 0x10a   : > { %v720_v60 = vmul.f32 %v1329_v11, %v592_v54  ;;  %v593_v61 = vmax.f32 %v527_v55, 0.0  ;;  %v529_v9 = vadd.f32 %v528_v19, %v1323_v8  ;;  %v744_v2 = vadd.f32 %v743_v59, %v719_v7  ;;  %v576_v48 = vpop.f32.mrf.mxu1 }
 0x10b   : > { %v723_v11 = vmul.f32 %v1347_v27, %v595_v58  ;;  %v553_v8 = vadd.f32 %v1355_v41, %v1353_v39  ;;  %v725_v39 = vmul.f32 %v1357_v46, %v597_v12  ;;  %v726_v38 = vmul.f32 %v1357_v46, %v598_v26 }
 0x10c   : > { %v721_v24 = vmul.f32 %v1337_v18, %v593_v61  ;;  %v594_v22 = vmax.f32 %v529_v9, 0.0  ;;  %v765_v29 = vadd.f32 %v764_v21, %v720_v60  ;;  %v604_v27 = vmax.f32 %v559_v35, 0.0  ;;  %v700_v60 = vpop.permute.xlu0 %699  ;;  %v705_v20 = vpop.permute.xlu1 %704 }
 0x10d   : > { %v602_v40 = vmax.f32 %v553_v8, 0.0  ;;  %v605_v47 = vmax.f32 %v563_v36, 0.0  ;;  %v571_v50 = vadd.f32 %v570_v15, %v362_v1  ;;  %v575_v52 = vadd.f32 %v574_v3, %v367_v62 }
 0x10e   : > { %v745_v30 = vadd.f32 %v744_v2, %v721_v24  ;;  %v722_v34 = vmul.f32 %v1337_v18, %v594_v22  ;;  %v565_v18 = vadd.f32 %v1378_v33, %v357_v43  ;;  %v731_v54 = vmul.f32 %v690_v31, %v603_v42 }
 0x10f   : > { %v730_v7 = vmul.f32 %v685_v57, %v602_v40  ;;  %v607_v43 = vmax.f32 %v569_v44, 0.0  ;;  %v577_v58 = vadd.f32 %v576_v48, %v367_v62  ;;  %v732_v6 = vmul.f32 %v690_v31, %v604_v27 }
 0x110   : > { %v746_v41 = vadd.f32 %v745_v30, %v723_v11  ;;  %v766_v49 = vadd.f32 %v765_v29, %v722_v34  ;;  %v606_v33 = vmax.f32 %v565_v18, 0.0  ;;  %v733_v10 = vmul.f32 %v695_v53, %v605_v47 }
 0x111   : > { %v608_v16 = vmax.f32 %v571_v50, 0.0  ;;  %v609_v25 = vmax.f32 %v575_v52, 0.0  ;;  %v735_v9 = vmul.f32 %v700_v60, %v607_v43  ;;  %v610_v12 = vmax.f32 %v577_v58, 0.0 }
 0x112   : > { %v747_v5 = vadd.f32 %v746_v41, %v725_v39  ;;  %v767_v56 = vadd.f32 %v766_v49, %v724_v37  ;;  %v734_v61 = vmul.f32 %v695_v53, %v606_v33  ;;  %v787_v11 = vlaneseq  ;;  %v785_v39 = vpop.permute.xlu0 %784 }
 0x113   : > { %v736_v57 = vmul.f32 %v700_v60, %v608_v16  ;;  %v737_v15 = vmul.f32 %v705_v20, %v609_v25  ;;  %v738_v22 = vmul.f32 %v705_v20, %v610_v12  ;;  %v1040_v31 = vmov 1966171168  }
 0x114   : > { %v748_v51 = vadd.f32 %v747_v5, %v727_v4  ;;  %v768_v46 = vadd.f32 %v767_v56, %v726_v38  ;;  %v788_v29 = vshrl.u32 %v787_v11, 7  ;;  %v797_v0 = vunpack.c.l.s4 %v1040_v31 }
 0x115   : > { %vm813_vm1 = vcmp.lt.s32.totalorder %v787_v11, 256 }
 0x116   : > { %v749_v55 = vadd.f32 %v748_v51, %v729_v45  ;;  %v769_v13 = vadd.f32 %v768_v46, %v728_v14  ;;  %v789_v36 = vsub.s32 0, %v788_v29  ;;  %v798_v41 = vunpack.c.0.s8 %v797_v0 }
 0x118   : > { %v750_v19 = vadd.f32 %v749_v55, %v731_v54  ;;  %v770_v59 = vadd.f32 %v769_v13, %v730_v7  ;;  %v790_v40 = vrot.slane %v785_v39, %v789_v36  ;;  %v801_v18 = vsub.s32 %v798_v41, %v788_v29 }
 0x11a   : > { %v751_v63 = vadd.f32 %v750_v19, %v733_v10  ;;  %v771_v17 = vadd.f32 %v770_v59, %v732_v6 }
 0x11c   : > { %v752_v21 = vadd.f32 %v751_v63, %v735_v9  ;;  %v772_v2 = vadd.f32 %v771_v17, %v734_v61 }
 0x11e   : > { %v753_v24 = vadd.f32 %v752_v21, %v737_v15  ;;  %v773_v1 = vadd.f32 %v772_v2, %v736_v57 }
 0x120   : > { %v754_v26 = vrot.slane %v753_v24, 4  ;;  %v774_v8 = vadd.f32 %v773_v1, %v738_v22 }
 0x122   : > { %v755_v28 = vadd.f32 %v754_v26, %v753_v24  ;;  %v775_v23 = vrot.slane %v774_v8, 4 }
 0x124   : > { %v756_v30 = vrot.slane %v755_v28, 2  ;;  %v776_v34 = vadd.f32 %v775_v23, %v774_v8 }
 0x126   : > { %v757_v32 = vadd.f32 %v756_v30, %v755_v28  ;;  %v777_v35 = vrot.slane %v776_v34, 2 }
 0x128   : > { %v758_v3 = vrot.slane %v757_v32, 1  ;;  %v778_v37 = vadd.f32 %v777_v35, %v776_v34 }
 0x12a   : > { %v759_v49 = vadd.f32 %v758_v3, %v757_v32  ;;  %v779_v38 = vrot.slane %v778_v37, 1 }
 0x12c   : > { %v780_v42 = vadd.f32 %v779_v38, %v778_v37  ;;  %v791_v4 = vadd.f32 %v790_v40, %v759_v49 }
 0x12e   : > { %v792_v44 = vadd.f32 %v790_v40, %v780_v42 }
 0x130   : > { %v795_v5 = vcombine.low %v791_v4, %v792_v44 }
 0x132   : > { %v802_v56 = vrot.slane %v795_v5, %v801_v18 }
 0x134   : > { %v809_v62 = vrot.slane %v802_v56, %v801_v18 }
 0x136   : > { %815 = vst.msk [vmem:[%s250_s18] sm:$0x3] %vm813_vm1, %v809_v62 }
 0x137   : > { %989 = shalt.err (!%p986_p5)
}
 0x138   : > { %s990_s10 = scalar_lea.hbm %s829_s27, 32  ;;  %s994_s12 = scalar_lea.hbm %s1461_s5, 64 }
 0x139   : > { %p991_p7 = scmp.ne.s32.totalorder %s829_s27, %s990_s10  ;;  %p995_p12 = scmp.lt.s32.totalorder %s829_s27, %s1461_s5 }
 0x13a   : > { %p996_p13 = scmp.lt.s32.totalorder %s994_s12, %s990_s10 }
 0x13b   : > { %p992_p10 = pnand %p991_p7, %p1113_p6 }
 0x13c   : > { %p997_p0 = por %p996_p13, %p995_p12 }
 0x13d   : > { %p993_p11 = pneg %p992_p10 }
 0x13f   : > { %p998_p9 = pnand %p997_p0, %p993_p11 }
 0x141   : > { %1001 = shalt.err (!%p998_p9)
}
 0x142   : > { %932 = dma.vmem_to_hbm [thread:$0]  (%p1113_p6), %s832_s19, 32, %s829_s27, %s817_s6  }
 0x143 PF: > { %s843_s16 = sand.u32 1, %s1024_s20   ;;  %p1465_p1 = scmp.ge.s32.totalorder %s1036_s23, 2 }
 0x144   : > { %s844_s17 = scalar_lea.sflag [#allocation5], %s843_s16 }
 0x145   : > { %p935_p2 = pnand %p1465_p1, %p1117_p8 }
 0x147   : > { %p936_p3 = pneg %p935_p2 }
 0x149   : > { %1019 = dma.done.wait (%p936_p3), %s844_s17, 32  }
 0x14a   : > { %1021 = vsyncadd (%p936_p3), %s844_s17, 4294967264  ;;  %p17_p9 = scmp.ge.s32.totalorder %s1098_s25, 4   ;;  %s1466_s20 = smov %s1028_s21 }
 0x14b   : > { %s1467_s21 = smov %s1032_s22  ;;  %s1468_s22 = smov %s1111_s28 }
 0x14c   : > { %s1469_s23 = smov %s1098_s25  ;;  %19 = sbr.rel (!%p17_p9) target bundleno = 6 (0x6), region = 103 }
 0x151   :  { %849 = vsyncpa [#allocation5], 1 }
 0x152   :  { %851 = vsyncpa [#allocation5 + $0x1], 1 }

</bundles_post_ra>
